<compile_context>
chip_gen: v5e
topology: v5e:2x2
jax: 0.10.0
libtpu: 0.0.40
codegen_flags: <defaults>
</compile_context>

<pallas_src>
import jax
import jax.numpy as jnp
from jax.experimental import pallas as pl
from jax.experimental.pallas import tpu as pltpu


_VMEM_LIMIT = 32 * 1024 * 1024   # explicit scoped-VMEM budget; safe on v5e/v6e/v7x
_MAX_TM = 2048                   # conv lane-tile cap (multiple of 128)
_MAX_TN = 2048                   # head lane-tile cap (multiple of 128)


# ---------------- Pallas kernels ----------------

def conv_pool_relu_kernel(p_ref, w_ref, b_ref, o_ref):
    """Fused conv (GEMM over im2col patches) + 2x2 max-pool + bias + ReLU.

    p_ref: (4, Kpad, TM) bf16 patches; leading dim = 2x2 pooling-window position.
    w_ref: (Cop, Kpad) bf16, b_ref: (Cop, 1) f32, o_ref: (Cop, TM) bf16.
    """
    r0 = jnp.dot(w_ref[...], p_ref[0], preferred_element_type=jnp.float32)
    r1 = jnp.dot(w_ref[...], p_ref[1], preferred_element_type=jnp.float32)
    r2 = jnp.dot(w_ref[...], p_ref[2], preferred_element_type=jnp.float32)
    r3 = jnp.dot(w_ref[...], p_ref[3], preferred_element_type=jnp.float32)
    m = jnp.maximum(jnp.maximum(r0, r1), jnp.maximum(r2, r3))
    # bias is per-channel and shared across the window: max(conv)+b == max(conv+b)
    o_ref[...] = jnp.maximum(m + b_ref[...], 0.0).astype(o_ref.dtype)


def head_kernel(x_ref, w1_ref, b1_ref, w2_ref, b2_ref, o_ref):
    """fc1 -> relu -> (dropout=identity) -> fc2 -> log_softmax, batch on lanes.

    x_ref: (320, TN) bf16, w1: (F1p, 320) bf16, b1: (F1p, 1) f32,
    w2: (10, F1p) f32, b2: (10, 1) f32, o_ref: (10, TN) f32.
    """
    h = jnp.dot(w1_ref[...], x_ref[...], preferred_element_type=jnp.float32) + b1_ref[...]
    h = jnp.maximum(h, 0.0)
    # TODO(synk): F.dropout(x, training=self.training) -> identity in eval mode.
    logits = jnp.dot(w2_ref[...], h, preferred_element_type=jnp.float32) + b2_ref[...]
    mx = jnp.max(logits, axis=0, keepdims=True)
    s = logits - mx
    lse = jnp.log(jnp.sum(jnp.exp(s), axis=0, keepdims=True))
    o_ref[...] = s - lse  # log_softmax over the class (sublane) axis


# ---------------- JAX glue ----------------

def _round_up(v, d):
    return ((v + d - 1) // d) * d


def _im2col_pooled(a, k):
    """(Cin, H, W, N) bf16 -> (4, K, M) bf16 patch slab, M ordered (hp, wp, n).

    Built with contiguous reshapes only (no global transpose of the slab); the
    M-order keeps activations channel-major so no inter-layer HBM transposes.
    """
    C, H, W, N = a.shape
    Ho, Wo = H - k + 1, W - k + 1
    Hp, Wp = Ho // 2, Wo // 2  # TODO(synk): assumes even Ho/Wo (true for 28x28 MNIST)
    K, M = k * k * C, Hp * Wp * N
    cols = jnp.stack([a[:, i:i + Ho, j:j + Wo, :]
                      for i in range(k) for j in range(k)], axis=0)    # (k*k, C, Ho, Wo, N)
    cols = cols.reshape(K, Ho, Wo, N)                                  # K order: (kh, kw, C)
    p4 = jnp.stack([cols[:, dy::2, dx::2, :]
                    for dy in range(2) for dx in range(2)], axis=0)    # (4, K, Hp, Wp, N)
    return p4.reshape(4, K, M), (Hp, Wp, M)


def conv_pool_relu(a, w, b):
    """relu(max_pool2d(conv2d(a), 2)) on a channel-major (Cin, H, W, N) input;
    returns a channel-major (Cout, Hp, Wp, N) bf16 activation."""
    Cout, Cin, k, _ = w.shape
    _, H, W, N = a.shape
    p4, (Hp, Wp, M) = _im2col_pooled(a.astype(jnp.bfloat16), k)
    K = k * k * Cin
    kpad = _round_up(K, 32)
    cop = _round_up(Cout, 16)                       # sublane-aligned output rows
    tm = min(_MAX_TM, _round_up(M, 128))            # big lane tiles amortize per-step overhead
    mpad = _round_up(M, tm)
    p4 = jnp.pad(p4, ((0, 0), (0, kpad - K), (0, mpad - M)))
    wk = jnp.pad(w.transpose(0, 2, 3, 1).reshape(Cout, K).astype(jnp.bfloat16),
                 ((0, cop - Cout), (0, kpad - K)))
    bk = jnp.pad(b.reshape(Cout, 1).astype(jnp.float32), ((0, cop - Cout), (0, 0)))
    out = pl.pallas_call(
        conv_pool_relu_kernel,
        out_shape=jax.ShapeDtypeStruct((cop, mpad), jnp.bfloat16),     # bf16 writeback
        grid=(mpad // tm,),
        in_specs=[pl.BlockSpec((4, kpad, tm), lambda i: (0, 0, i)),    # patch tile (pipelined)
                  pl.BlockSpec((cop, kpad), lambda i: (0, 0)),         # weights resident
                  pl.BlockSpec((cop, 1), lambda i: (0, 0))],           # bias resident
        out_specs=pl.BlockSpec((cop, tm), lambda i: (0, i)),           # lane-dense output
        compiler_params=pltpu.CompilerParams(
            dimension_semantics=("parallel",),
            vmem_limit_bytes=_VMEM_LIMIT),
    )(p4, wk, bk)
    # Free reshape: exactly the next layer's (C, H, W, N) input layout.
    return out[:Cout, :M].reshape(Cout, Hp, Wp, N)


def mlp_head(xh, params):
    """xh: (320, N) bf16, rows in PyTorch .view(-1, 320) order -> (N, 10) f32."""
    kin, n = xh.shape
    tn = min(_MAX_TN, _round_up(n, 128))
    npad = _round_up(n, tn)
    xh = jnp.pad(xh, ((0, 0), (0, npad - n)))
    f1, nclass = params["fc1_w"].shape[0], params["fc2_w"].shape[0]
    f1p = _round_up(f1, 16)
    w1 = jnp.pad(params["fc1_w"].astype(jnp.bfloat16), ((0, f1p - f1), (0, 0)))
    b1 = jnp.pad(params["fc1_b"].reshape(f1, 1).astype(jnp.float32), ((0, f1p - f1), (0, 0)))
    w2 = jnp.pad(params["fc2_w"].astype(jnp.float32), ((0, 0), (0, f1p - f1)))   # fc2 kept in f32
    b2 = params["fc2_b"].reshape(nclass, 1).astype(jnp.float32)
    out_t = pl.pallas_call(
        head_kernel,
        out_shape=jax.ShapeDtypeStruct((nclass, npad), jnp.float32),
        grid=(npad // tn,),
        in_specs=[pl.BlockSpec((kin, tn), lambda i: (0, i)),           # batch tile (pipelined)
                  pl.BlockSpec((f1p, kin), lambda i: (0, 0)),
                  pl.BlockSpec((f1p, 1), lambda i: (0, 0)),
                  pl.BlockSpec((nclass, f1p), lambda i: (0, 0)),
                  pl.BlockSpec((nclass, 1), lambda i: (0, 0))],
        out_specs=pl.BlockSpec((nclass, tn), lambda i: (0, i)),
        compiler_params=pltpu.CompilerParams(
            dimension_semantics=("parallel",),
            vmem_limit_bytes=_VMEM_LIMIT),
    )(xh, w1, b1, w2, b2)
    return out_t[:, :n].T  # (N, 10)


def net_forward(x_nchw, params):
    n = x_nchw.shape[0]
    # NCHW -> channel-major, batch-innermost (C, H, W, N): the ONLY activation
    # transpose in the whole forward pass.
    a = x_nchw.transpose(1, 2, 3, 0)
    # x = relu(max_pool2d(conv1(x), 2))
    a = conv_pool_relu(a, params["conv1_w"], params["conv1_b"])        # (10, 12, 12, N)
    # x = relu(max_pool2d(conv2_drop(conv2(x)), 2))
    # TODO(synk): Dropout2d is identity at inference; training-mode channel dropout not implemented.
    a = conv_pool_relu(a, params["conv2_w"], params["conv2_b"])        # (20, 4, 4, N)
    c, hp, wp, _ = a.shape
    # (20,4,4,N) -> (320,N): contiguous merge; row order (c, hp, wp) matches
    # PyTorch's x.view(-1, 320), so fc1 weights are used unpermuted.
    xh = a.reshape(c * hp * wp, n)
    return mlp_head(xh, params)


# ---------------- reference & demo ----------------

def reference_forward(x_nchw, params):
    def conv(x, w, b):
        y = jax.lax.conv_general_dilated(x, w, (1, 1), "VALID",
                                         dimension_numbers=("NCHW", "OIHW", "NCHW"))
        return y + b.reshape(1, -1, 1, 1)

    def pool2(x):
        return jax.lax.reduce_window(x, -jnp.inf, jax.lax.max,
                                     (1, 1, 2, 2), (1, 1, 2, 2), "VALID")

    x = jax.nn.relu(pool2(conv(x_nchw, params["conv1_w"], params["conv1_b"])))
    x = jax.nn.relu(pool2(conv(x, params["conv2_w"], params["conv2_b"])))
    x = x.reshape(x.shape[0], -1)
    x = jax.nn.relu(x @ params["fc1_w"].T + params["fc1_b"])
    x = x @ params["fc2_w"].T + params["fc2_b"]
    return jax.nn.log_softmax(x, axis=1)


def init_params(key):
    ks = jax.random.split(key, 8)

    def u(k, shape, fan_in):
        bound = 1.0 / (fan_in ** 0.5)
        return jax.random.uniform(k, shape, jnp.float32, -bound, bound)

    return {
        "conv1_w": u(ks[0], (10, 1, 5, 5), 25),
        "conv1_b": u(ks[1], (10,), 25),
        "conv2_w": u(ks[2], (20, 10, 5, 5), 250),
        "conv2_b": u(ks[3], (20,), 250),
        "fc1_w":   u(ks[4], (50, 320), 320),   # PyTorch layout (out, in)
        "fc1_b":   u(ks[5], (50,), 320),
        "fc2_w":   u(ks[6], (10, 50), 50),
        "fc2_b":   u(ks[7], (10,), 50),
    }


if __name__ == "__main__":
    key = jax.random.PRNGKey(0)
    pkey, xkey = jax.random.split(key)
    params = init_params(pkey)
    # MNIST-shaped input is required for the .view(-1, 320) to hold: (N, 1, 28, 28)
    x = jax.random.normal(xkey, (2, 1, 28, 28), jnp.float32)

    out = jax.jit(net_forward)(x, params)
    out = jax.block_until_ready(out)

    assert out.shape == (2, 10)
    assert bool(jnp.all(jnp.isfinite(out)))
    # rows of log_softmax must exponentiate to ~1
    assert bool(jnp.allclose(jnp.sum(jnp.exp(out), axis=1), 1.0, atol=1e-4))
    # loose tolerance vs a pure-JAX f32 reference (bf16 MXU inputs)
    ref = reference_forward(x, params)
    assert bool(jnp.max(jnp.abs(out - ref)) < 0.1)
    print("KERNEL_OK")
</pallas_src>

<mosaic_0001>
module attributes {stable_mosaic.version = 11 : i64} {
  func.func @conv_pool_relu_kernel(%arg0: i32, %arg1: memref<4x32x384xbf16, #tpu.memory_space<vmem>>, %arg2: memref<16x32xbf16, #tpu.memory_space<vmem>>, %arg3: memref<16x1xf32, #tpu.memory_space<vmem>>, %arg4: memref<16x384xbf16, #tpu.memory_space<vmem>>) attributes {dimension_semantics = [#tpu.dimension_semantics<parallel>], iteration_bounds = array<i64: 1>, scalar_prefetch = 0 : i64, scratch_operands = 0 : i64, tpu.core_type = #tpu.core_type<tc>, window_params = [{transform_indices = @transform_0, window_bounds = array<i64: 4, 32, 384>}, {pipeline_mode = #tpu.pipeline_mode<synchronous>, transform_indices = @transform_1, window_bounds = array<i64: 16, 32>}, {pipeline_mode = #tpu.pipeline_mode<synchronous>, transform_indices = @transform_2, window_bounds = array<i64: 16, 1>}, {transform_indices = @transform_3, window_bounds = array<i64: 16, 384>}]} {
    %c0 = arith.constant 0 : index
    %c0_0 = arith.constant 0 : index
    %0 = vector.load %arg2[%c0, %c0_0] : memref<16x32xbf16, #tpu.memory_space<vmem>>, vector<16x32xbf16>
    %c0_1 = arith.constant 0 : index
    %c0_2 = arith.constant 0 : index
    %c0_3 = arith.constant 0 : index
    %1 = vector.load %arg1[%c0_1, %c0_2, %c0_3] : memref<4x32x384xbf16, #tpu.memory_space<vmem>>, vector<1x32x384xbf16>
    %2 = vector.shape_cast %1 : vector<1x32x384xbf16> to vector<32x384xbf16>
    %cst = arith.constant dense<0.000000e+00> : vector<16x384xf32>
    %3 = tpu.matmul %0, %2, %cst {dimension_numbers = #tpu.dot_dimension_numbers<[1], [0], [0], [1], [0, 0, 1, 1], [], []>} : vector<16x32xbf16>, vector<32x384xbf16>, vector<16x384xf32> -> vector<16x384xf32>
    %c0_4 = arith.constant 0 : index
    %c0_5 = arith.constant 0 : index
    %4 = vector.load %arg2[%c0_4, %c0_5] : memref<16x32xbf16, #tpu.memory_space<vmem>>, vector<16x32xbf16>
    %c1 = arith.constant 1 : index
    %c0_6 = arith.constant 0 : index
    %c0_7 = arith.constant 0 : index
    %5 = vector.load %arg1[%c1, %c0_6, %c0_7] : memref<4x32x384xbf16, #tpu.memory_space<vmem>>, vector<1x32x384xbf16>
    %6 = vector.shape_cast %5 : vector<1x32x384xbf16> to vector<32x384xbf16>
    %cst_8 = arith.constant dense<0.000000e+00> : vector<16x384xf32>
    %7 = tpu.matmul %4, %6, %cst_8 {dimension_numbers = #tpu.dot_dimension_numbers<[1], [0], [0], [1], [0, 0, 1, 1], [], []>} : vector<16x32xbf16>, vector<32x384xbf16>, vector<16x384xf32> -> vector<16x384xf32>
    %c0_9 = arith.constant 0 : index
    %c0_10 = arith.constant 0 : index
    %8 = vector.load %arg2[%c0_9, %c0_10] : memref<16x32xbf16, #tpu.memory_space<vmem>>, vector<16x32xbf16>
    %c2 = arith.constant 2 : index
    %c0_11 = arith.constant 0 : index
    %c0_12 = arith.constant 0 : index
    %9 = vector.load %arg1[%c2, %c0_11, %c0_12] : memref<4x32x384xbf16, #tpu.memory_space<vmem>>, vector<1x32x384xbf16>
    %10 = vector.shape_cast %9 : vector<1x32x384xbf16> to vector<32x384xbf16>
    %cst_13 = arith.constant dense<0.000000e+00> : vector<16x384xf32>
    %11 = tpu.matmul %8, %10, %cst_13 {dimension_numbers = #tpu.dot_dimension_numbers<[1], [0], [0], [1], [0, 0, 1, 1], [], []>} : vector<16x32xbf16>, vector<32x384xbf16>, vector<16x384xf32> -> vector<16x384xf32>
    %c0_14 = arith.constant 0 : index
    %c0_15 = arith.constant 0 : index
    %12 = vector.load %arg2[%c0_14, %c0_15] : memref<16x32xbf16, #tpu.memory_space<vmem>>, vector<16x32xbf16>
    %c3 = arith.constant 3 : index
    %c0_16 = arith.constant 0 : index
    %c0_17 = arith.constant 0 : index
    %13 = vector.load %arg1[%c3, %c0_16, %c0_17] : memref<4x32x384xbf16, #tpu.memory_space<vmem>>, vector<1x32x384xbf16>
    %14 = vector.shape_cast %13 : vector<1x32x384xbf16> to vector<32x384xbf16>
    %cst_18 = arith.constant dense<0.000000e+00> : vector<16x384xf32>
    %15 = tpu.matmul %12, %14, %cst_18 {dimension_numbers = #tpu.dot_dimension_numbers<[1], [0], [0], [1], [0, 0, 1, 1], [], []>} : vector<16x32xbf16>, vector<32x384xbf16>, vector<16x384xf32> -> vector<16x384xf32>
    %16 = arith.maximumf %3, %7 : vector<16x384xf32>
    %17 = arith.maximumf %11, %15 : vector<16x384xf32>
    %18 = arith.maximumf %16, %17 : vector<16x384xf32>
    %c0_19 = arith.constant 0 : index
    %c0_20 = arith.constant 0 : index
    %19 = vector.load %arg3[%c0_19, %c0_20] : memref<16x1xf32, #tpu.memory_space<vmem>>, vector<16x1xf32>
    %20 = vector.broadcast %19 : vector<16x1xf32> to vector<16x384xf32>
    %21 = arith.addf %18, %20 : vector<16x384xf32>
    %cst_21 = arith.constant 0.000000e+00 : f32
    %22 = vector.broadcast %cst_21 : f32 to vector<16x384xf32>
    %23 = arith.maximumf %21, %22 : vector<16x384xf32>
    %24 = arith.truncf %23 : vector<16x384xf32> to vector<16x384xbf16>
    %c0_22 = arith.constant 0 : index
    %c0_23 = arith.constant 0 : index
    %25 = vector.load %arg4[%c0_22, %c0_23] : memref<16x384xbf16, #tpu.memory_space<vmem>>, vector<16x384xbf16>
    tpu.vector_store %arg4[%c0_22, %c0_23], %24 {strides = array<i32>} : memref<16x384xbf16, #tpu.memory_space<vmem>>, vector<16x384xbf16>,
    return
  }
  func.func @transform_0(%arg0: i32) -> (i32, i32, i32) {
    %c0_i32 = arith.constant 0 : i32
    %c0_i32_0 = arith.constant 0 : i32
    %c0_i32_1 = arith.constant 0 : i32
    return %c0_i32, %c0_i32_0, %arg0 : i32, i32, i32
  }
  func.func @transform_1(%arg0: i32) -> (i32, i32) {
    %c0_i32 = arith.constant 0 : i32
    %c0_i32_0 = arith.constant 0 : i32
    %c0_i32_1 = arith.constant 0 : i32
    return %c0_i32, %c0_i32_0 : i32, i32
  }
  func.func @transform_2(%arg0: i32) -> (i32, i32) {
    %c0_i32 = arith.constant 0 : i32
    %c0_i32_0 = arith.constant 0 : i32
    %c0_i32_1 = arith.constant 0 : i32
    return %c0_i32, %c0_i32_0 : i32, i32
  }
  func.func @transform_3(%arg0: i32) -> (i32, i32) {
    %c0_i32 = arith.constant 0 : i32
    %c0_i32_0 = arith.constant 0 : i32
    return %c0_i32, %arg0 : i32, i32
  }
}

module attributes {stable_mosaic.version = 11 : i64} {
  func.func @conv_pool_relu_kernel(%arg0: i32, %arg1: memref<4x256x128xbf16, #tpu.memory_space<vmem>>, %arg2: memref<32x256xbf16, #tpu.memory_space<vmem>>, %arg3: memref<32x1xf32, #tpu.memory_space<vmem>>, %arg4: memref<32x128xbf16, #tpu.memory_space<vmem>>) attributes {dimension_semantics = [#tpu.dimension_semantics<parallel>], iteration_bounds = array<i64: 1>, scalar_prefetch = 0 : i64, scratch_operands = 0 : i64, tpu.core_type = #tpu.core_type<tc>, window_params = [{transform_indices = @transform_0, window_bounds = array<i64: 4, 256, 128>}, {pipeline_mode = #tpu.pipeline_mode<synchronous>, transform_indices = @transform_1, window_bounds = array<i64: 32, 256>}, {pipeline_mode = #tpu.pipeline_mode<synchronous>, transform_indices = @transform_2, window_bounds = array<i64: 32, 1>}, {transform_indices = @transform_3, window_bounds = array<i64: 32, 128>}]} {
    %c0 = arith.constant 0 : index
    %c0_0 = arith.constant 0 : index
    %0 = vector.load %arg2[%c0, %c0_0] : memref<32x256xbf16, #tpu.memory_space<vmem>>, vector<32x256xbf16>
    %c0_1 = arith.constant 0 : index
    %c0_2 = arith.constant 0 : index
    %c0_3 = arith.constant 0 : index
    %1 = vector.load %arg1[%c0_1, %c0_2, %c0_3] : memref<4x256x128xbf16, #tpu.memory_space<vmem>>, vector<1x256x128xbf16>
    %2 = vector.shape_cast %1 : vector<1x256x128xbf16> to vector<256x128xbf16>
    %cst = arith.constant dense<0.000000e+00> : vector<32x128xf32>
    %3 = tpu.matmul %0, %2, %cst {dimension_numbers = #tpu.dot_dimension_numbers<[1], [0], [0], [1], [0, 0, 1, 1], [], []>} : vector<32x256xbf16>, vector<256x128xbf16>, vector<32x128xf32> -> vector<32x128xf32>
    %c0_4 = arith.constant 0 : index
    %c0_5 = arith.constant 0 : index
    %4 = vector.load %arg2[%c0_4, %c0_5] : memref<32x256xbf16, #tpu.memory_space<vmem>>, vector<32x256xbf16>
    %c1 = arith.constant 1 : index
    %c0_6 = arith.constant 0 : index
    %c0_7 = arith.constant 0 : index
    %5 = vector.load %arg1[%c1, %c0_6, %c0_7] : memref<4x256x128xbf16, #tpu.memory_space<vmem>>, vector<1x256x128xbf16>
    %6 = vector.shape_cast %5 : vector<1x256x128xbf16> to vector<256x128xbf16>
    %cst_8 = arith.constant dense<0.000000e+00> : vector<32x128xf32>
    %7 = tpu.matmul %4, %6, %cst_8 {dimension_numbers = #tpu.dot_dimension_numbers<[1], [0], [0], [1], [0, 0, 1, 1], [], []>} : vector<32x256xbf16>, vector<256x128xbf16>, vector<32x128xf32> -> vector<32x128xf32>
    %c0_9 = arith.constant 0 : index
    %c0_10 = arith.constant 0 : index
    %8 = vector.load %arg2[%c0_9, %c0_10] : memref<32x256xbf16, #tpu.memory_space<vmem>>, vector<32x256xbf16>
    %c2 = arith.constant 2 : index
    %c0_11 = arith.constant 0 : index
    %c0_12 = arith.constant 0 : index
    %9 = vector.load %arg1[%c2, %c0_11, %c0_12] : memref<4x256x128xbf16, #tpu.memory_space<vmem>>, vector<1x256x128xbf16>
    %10 = vector.shape_cast %9 : vector<1x256x128xbf16> to vector<256x128xbf16>
    %cst_13 = arith.constant dense<0.000000e+00> : vector<32x128xf32>
    %11 = tpu.matmul %8, %10, %cst_13 {dimension_numbers = #tpu.dot_dimension_numbers<[1], [0], [0], [1], [0, 0, 1, 1], [], []>} : vector<32x256xbf16>, vector<256x128xbf16>, vector<32x128xf32> -> vector<32x128xf32>
    %c0_14 = arith.constant 0 : index
    %c0_15 = arith.constant 0 : index
    %12 = vector.load %arg2[%c0_14, %c0_15] : memref<32x256xbf16, #tpu.memory_space<vmem>>, vector<32x256xbf16>
    %c3 = arith.constant 3 : index
    %c0_16 = arith.constant 0 : index
    %c0_17 = arith.constant 0 : index
    %13 = vector.load %arg1[%c3, %c0_16, %c0_17] : memref<4x256x128xbf16, #tpu.memory_space<vmem>>, vector<1x256x128xbf16>
    %14 = vector.shape_cast %13 : vector<1x256x128xbf16> to vector<256x128xbf16>
    %cst_18 = arith.constant dense<0.000000e+00> : vector<32x128xf32>
    %15 = tpu.matmul %12, %14, %cst_18 {dimension_numbers = #tpu.dot_dimension_numbers<[1], [0], [0], [1], [0, 0, 1, 1], [], []>} : vector<32x256xbf16>, vector<256x128xbf16>, vector<32x128xf32> -> vector<32x128xf32>
    %16 = arith.maximumf %3, %7 : vector<32x128xf32>
    %17 = arith.maximumf %11, %15 : vector<32x128xf32>
    %18 = arith.maximumf %16, %17 : vector<32x128xf32>
    %c0_19 = arith.constant 0 : index
    %c0_20 = arith.constant 0 : index
    %19 = vector.load %arg3[%c0_19, %c0_20] : memref<32x1xf32, #tpu.memory_space<vmem>>, vector<32x1xf32>
    %20 = vector.broadcast %19 : vector<32x1xf32> to vector<32x128xf32>
    %21 = arith.addf %18, %20 : vector<32x128xf32>
    %cst_21 = arith.constant 0.000000e+00 : f32
    %22 = vector.broadcast %cst_21 : f32 to vector<32x128xf32>
    %23 = arith.maximumf %21, %22 : vector<32x128xf32>
    %24 = arith.truncf %23 : vector<32x128xf32> to vector<32x128xbf16>
    %c0_22 = arith.constant 0 : index
    %c0_23 = arith.constant 0 : index
    %25 = vector.load %arg4[%c0_22, %c0_23] : memref<32x128xbf16, #tpu.memory_space<vmem>>, vector<32x128xbf16>
    tpu.vector_store %arg4[%c0_22, %c0_23], %24 {strides = array<i32>} : memref<32x128xbf16, #tpu.memory_space<vmem>>, vector<32x128xbf16>,
    return
  }
  func.func @transform_0(%arg0: i32) -> (i32, i32, i32) {
    %c0_i32 = arith.constant 0 : i32
    %c0_i32_0 = arith.constant 0 : i32
    %c0_i32_1 = arith.constant 0 : i32
    return %c0_i32, %c0_i32_0, %arg0 : i32, i32, i32
  }
  func.func @transform_1(%arg0: i32) -> (i32, i32) {
    %c0_i32 = arith.constant 0 : i32
    %c0_i32_0 = arith.constant 0 : i32
    %c0_i32_1 = arith.constant 0 : i32
    return %c0_i32, %c0_i32_0 : i32, i32
  }
  func.func @transform_2(%arg0: i32) -> (i32, i32) {
    %c0_i32 = arith.constant 0 : i32
    %c0_i32_0 = arith.constant 0 : i32
    %c0_i32_1 = arith.constant 0 : i32
    return %c0_i32, %c0_i32_0 : i32, i32
  }
  func.func @transform_3(%arg0: i32) -> (i32, i32) {
    %c0_i32 = arith.constant 0 : i32
    %c0_i32_0 = arith.constant 0 : i32
    return %c0_i32, %arg0 : i32, i32
  }
}

module attributes {stable_mosaic.version = 11 : i64} {
  func.func @head_kernel(%arg0: i32, %arg1: memref<320x128xbf16, #tpu.memory_space<vmem>>, %arg2: memref<64x320xbf16, #tpu.memory_space<vmem>>, %arg3: memref<64x1xf32, #tpu.memory_space<vmem>>, %arg4: memref<10x64xf32, #tpu.memory_space<vmem>>, %arg5: memref<10x1xf32, #tpu.memory_space<vmem>>, %arg6: memref<10x128xf32, #tpu.memory_space<vmem>>) attributes {dimension_semantics = [#tpu.dimension_semantics<parallel>], iteration_bounds = array<i64: 1>, scalar_prefetch = 0 : i64, scratch_operands = 0 : i64, tpu.core_type = #tpu.core_type<tc>, window_params = [{transform_indices = @transform_0, window_bounds = array<i64: 320, 128>}, {pipeline_mode = #tpu.pipeline_mode<synchronous>, transform_indices = @transform_1, window_bounds = array<i64: 64, 320>}, {pipeline_mode = #tpu.pipeline_mode<synchronous>, transform_indices = @transform_2, window_bounds = array<i64: 64, 1>}, {pipeline_mode = #tpu.pipeline_mode<synchronous>, transform_indices = @transform_3, window_bounds = array<i64: 10, 64>}, {pipeline_mode = #tpu.pipeline_mode<synchronous>, transform_indices = @transform_4, window_bounds = array<i64: 10, 1>}, {transform_indices = @transform_5, window_bounds = array<i64: 10, 128>}]} {
    %c0 = arith.constant 0 : index
    %c0_0 = arith.constant 0 : index
    %0 = vector.load %arg2[%c0, %c0_0] : memref<64x320xbf16, #tpu.memory_space<vmem>>, vector<64x320xbf16>
    %c0_1 = arith.constant 0 : index
    %c0_2 = arith.constant 0 : index
    %1 = vector.load %arg1[%c0_1, %c0_2] : memref<320x128xbf16, #tpu.memory_space<vmem>>, vector<320x128xbf16>
    %cst = arith.constant dense<0.000000e+00> : vector<64x128xf32>
    %2 = tpu.matmul %0, %1, %cst {dimension_numbers = #tpu.dot_dimension_numbers<[1], [0], [0], [1], [0, 0, 1, 1], [], []>} : vector<64x320xbf16>, vector<320x128xbf16>, vector<64x128xf32> -> vector<64x128xf32>
    %c0_3 = arith.constant 0 : index
    %c0_4 = arith.constant 0 : index
    %3 = vector.load %arg3[%c0_3, %c0_4] : memref<64x1xf32, #tpu.memory_space<vmem>>, vector<64x1xf32>
    %4 = vector.broadcast %3 : vector<64x1xf32> to vector<64x128xf32>
    %5 = arith.addf %2, %4 : vector<64x128xf32>
    %cst_5 = arith.constant 0.000000e+00 : f32
    %6 = vector.broadcast %cst_5 : f32 to vector<64x128xf32>
    %7 = arith.maximumf %5, %6 : vector<64x128xf32>
    %c0_6 = arith.constant 0 : index
    %c0_7 = arith.constant 0 : index
    %8 = vector.load %arg4[%c0_6, %c0_7] : memref<10x64xf32, #tpu.memory_space<vmem>>, vector<10x64xf32>
    %cst_8 = arith.constant dense<0.000000e+00> : vector<10x128xf32>
    %9 = tpu.matmul %8, %7, %cst_8 {dimension_numbers = #tpu.dot_dimension_numbers<[1], [0], [0], [1], [0, 0, 1, 1], [], []>} : vector<10x64xf32>, vector<64x128xf32>, vector<10x128xf32> -> vector<10x128xf32>
    %c0_9 = arith.constant 0 : index
    %c0_10 = arith.constant 0 : index
    %10 = vector.load %arg5[%c0_9, %c0_10] : memref<10x1xf32, #tpu.memory_space<vmem>>, vector<10x1xf32>
    %11 = vector.broadcast %10 : vector<10x1xf32> to vector<10x128xf32>
    %12 = arith.addf %9, %11 : vector<10x128xf32>
    %cst_11 = arith.constant dense<0xFF800000> : vector<128xf32>
    %13 = vector.multi_reduction <maximumf>, %12, %cst_11 [0] : vector<10x128xf32> to vector<128xf32>
    %14 = vector.shape_cast %13 : vector<128xf32> to vector<1x128xf32>
    %15 = vector.broadcast %14 : vector<1x128xf32> to vector<10x128xf32>
    %16 = arith.subf %12, %15 : vector<10x128xf32>
    %17 = math.exp %16 : vector<10x128xf32>
    %cst_12 = arith.constant dense<0.000000e+00> : vector<128xf32>
    %18 = vector.multi_reduction <add>, %17, %cst_12 [0] : vector<10x128xf32> to vector<128xf32>
    %19 = vector.shape_cast %18 : vector<128xf32> to vector<1x128xf32>
    %20 = math.log %19 : vector<1x128xf32>
    %21 = vector.broadcast %20 : vector<1x128xf32> to vector<10x128xf32>
    %22 = arith.subf %16, %21 : vector<10x128xf32>
    %c0_13 = arith.constant 0 : index
    %c0_14 = arith.constant 0 : index
    %23 = vector.load %arg6[%c0_13, %c0_14] : memref<10x128xf32, #tpu.memory_space<vmem>>, vector<10x128xf32>
    tpu.vector_store %arg6[%c0_13, %c0_14], %22 {strides = array<i32>} : memref<10x128xf32, #tpu.memory_space<vmem>>, vector<10x128xf32>,
    return
  }
  func.func @transform_0(%arg0: i32) -> (i32, i32) {
    %c0_i32 = arith.constant 0 : i32
    %c0_i32_0 = arith.constant 0 : i32
    return %c0_i32, %arg0 : i32, i32
  }
  func.func @transform_1(%arg0: i32) -> (i32, i32) {
    %c0_i32 = arith.constant 0 : i32
    %c0_i32_0 = arith.constant 0 : i32
    %c0_i32_1 = arith.constant 0 : i32
    return %c0_i32, %c0_i32_0 : i32, i32
  }
  func.func @transform_2(%arg0: i32) -> (i32, i32) {
    %c0_i32 = arith.constant 0 : i32
    %c0_i32_0 = arith.constant 0 : i32
    %c0_i32_1 = arith.constant 0 : i32
    return %c0_i32, %c0_i32_0 : i32, i32
  }
  func.func @transform_3(%arg0: i32) -> (i32, i32) {
    %c0_i32 = arith.constant 0 : i32
    %c0_i32_0 = arith.constant 0 : i32
    %c0_i32_1 = arith.constant 0 : i32
    return %c0_i32, %c0_i32_0 : i32, i32
  }
  func.func @transform_4(%arg0: i32) -> (i32, i32) {
    %c0_i32 = arith.constant 0 : i32
    %c0_i32_0 = arith.constant 0 : i32
    %c0_i32_1 = arith.constant 0 : i32
    return %c0_i32, %c0_i32_0 : i32, i32
  }
  func.func @transform_5(%arg0: i32) -> (i32, i32) {
    %c0_i32 = arith.constant 0 : i32
    %c0_i32_0 = arith.constant 0 : i32
    return %c0_i32, %arg0 : i32, i32
  }
}

</mosaic_0001>

<bundles_post_ra>
// kernel: net_forward.3
= control target key start
LH: loop header
LB: loop body
LE: loop exit
PB: predicated region body
PF: predicated region fallthrough
CT: control target
= control target key end

     0   :  { %vm62_vm0 = vcmask 261120   ;;  %s786_s0 = inlined_call_operand.vmem [shape: bf16[4,32,384], index: 0, kind: input, shape index: {}]   ;;  %s787_s1 = inlined_call_operand.vmem [shape: bf16[16,32], index: 1, kind: input, shape index: {}]   ;;  %s788_s2 = inlined_call_operand.vmem [shape: f32[16,1], index: 2, kind: input, shape index: {}]   ;;  %s789_s3 = inlined_call_operand.vmem [shape: bf16[16,384], index: 3, kind: output, shape index: {}]  }
   0x1   :  { %v429_v0 = vld [vmem:[%s786_s0 + $0x18] sm:$0xf]  ;;  %v552_v1 = vld [vmem:[%s786_s0 + $0x20] sm:$0xf0]  ;;  %v551_v2 = vld [vmem:[%s786_s0 + $0x1c] sm:$0xf] }
   0x2   :  { %v430_v3 = vor.u32 %v552_v1, %v429_v0  ;;  %v431_v4 = vld [vmem:[%s786_s0 + $0x24] sm:$0xf0]  ;;  %v437_v5 = vld [vmem:[%s786_s0 + $0x20] sm:$0xf]  ;;  %v553_v6 = vld [vmem:[%s786_s0 + $0x28] sm:$0xf0] }
   0x3   :  { %v434_v7 = vor.u32 %v551_v2, %v431_v4  ;;  %v438_v8 = vor.u32 %v553_v6, %v437_v5  ;;  %v464_v9 = vld [vmem:[%s786_s0 + $0x48] sm:$0xf]  ;;  %v558_v10 = vld [vmem:[%s786_s0 + $0x50] sm:$0xf0]  ;;  %v417_v11 = vld [vmem:[%s786_s0] sm:$0xf] }
   0x4   :  { %72 = vmatpush.bf16.msra.mxu0 %v430_v3  ;;  %v465_v12 = vor.u32 %v558_v10, %v464_v9  ;;  %v549_v13 = vld [vmem:[%s786_s0 + $0x8] sm:$0xf0]  ;;  %v548_v14 = vld [vmem:[%s786_s0 + $0x4] sm:$0xf]  ;;  %v419_v15 = vld [vmem:[%s786_s0 + $0xc] sm:$0xf0] }
   0x5   :  { %86 = vmatpush.bf16.msra.mxu1 %v434_v7  ;;  %100 = vmatpush.bf16.msra.mxu2 %v438_v8  ;;  %v418_v16 = vor.u32 %v549_v13, %v417_v11  ;;  %v422_v17 = vor.u32 %v548_v14, %v419_v15  ;;  %v425_v18 = vld [vmem:[%s786_s0 + $0x8] sm:$0xf]  ;;  %v550_v19 = vld [vmem:[%s786_s0 + $0x10] sm:$0xf0]  ;;  %v452_v20 = vld [vmem:[%s786_s0 + $0x30] sm:$0xf] }
   0x6   :  { %155 = vmatpush.bf16.msra.mxu3 %v465_v12  ;;  %v426_v21 = vor.u32 %v550_v19, %v425_v18  ;;  %v555_v22 = vld [vmem:[%s786_s0 + $0x38] sm:$0xf0]  ;;  %v646_v23 = vld [vmem:[%s787_s1] sm:$0xff]  ;;  %v499_v24 = vld [vmem:[%s786_s0 + $0x78] sm:$0xf]  ;;  %v574_v10 = vmov 0  }
   0x7   :  { %v453_v25 = vor.u32 %v555_v22, %v452_v20  ;;  %v564_v26 = vld [vmem:[%s786_s0 + $0x80] sm:$0xf0]  ;;  %v563_v27 = vld [vmem:[%s786_s0 + $0x7c] sm:$0xf]  ;;  %v501_v28 = vld [vmem:[%s786_s0 + $0x84] sm:$0xf0]  ;;  %573 = vset.pattern.permute.xlu0 %v574_v10 }
   0x8   :  { %73 = vmatpush.bf16.msra.mxu0 %v418_v16  ;;  %v500_v29 = vor.u32 %v564_v26, %v499_v24  ;;  %v504_v30 = vor.u32 %v563_v27, %v501_v28  ;;  %v557_v31 = vld [vmem:[%s786_s0 + $0x4c] sm:$0xf]  ;;  %v466_v32 = vld [vmem:[%s786_s0 + $0x54] sm:$0xf0]  ;;  %v472_v33 = vld [vmem:[%s786_s0 + $0x50] sm:$0xf] }
   0x9   :  { %87 = vmatpush.bf16.msra.mxu1 %v422_v17  ;;  %101 = vmatpush.bf16.msra.mxu2 %v426_v21  ;;  %v469_v34 = vor.u32 %v557_v31, %v466_v32  ;;  %v559_v35 = vld [vmem:[%s786_s0 + $0x58] sm:$0xf0]  ;;  %v487_v36 = vld [vmem:[%s786_s0 + $0x60] sm:$0xf]  ;;  %v561_v37 = vld [vmem:[%s786_s0 + $0x68] sm:$0xf0] }
   0xa   :  { %156 = vmatpush.bf16.msra.mxu3 %v453_v25  ;;  %v473_v38 = vor.u32 %v559_v35, %v472_v33  ;;  %v488_v39 = vor.u32 %v561_v37, %v487_v36  ;;  %v560_v40 = vld [vmem:[%s786_s0 + $0x64] sm:$0xf]  ;;  %v489_v41 = vld [vmem:[%s786_s0 + $0x6c] sm:$0xf0]  ;;  %v554_v42 = vld [vmem:[%s786_s0 + $0x34] sm:$0xf] }
   0xb   :  { %439 = vmatmul.msk.bf16.vlgmr.msra.gmra.mxu0 %vm62_vm0, %v646_v23  ;;  %v492_v43 = vor.u32 %v560_v40, %v489_v41  ;;  %v454_v44 = vld [vmem:[%s786_s0 + $0x3c] sm:$0xf0]  ;;  %v460_v45 = vld [vmem:[%s786_s0 + $0x38] sm:$0xf]  ;;  %v556_v46 = vld [vmem:[%s786_s0 + $0x40] sm:$0xf0] }
   0xc   :  { %440 = vmatmul.msk.bf16.vlgmr.msra.gmra.mxu1 %vm62_vm0, %v646_v23  ;;  %441 = vmatmul.msk.bf16.vlgmr.msra.gmra.mxu2 %vm62_vm0, %v646_v23  ;;  %v569_v47 = vld [vmem:[%s786_s0 + $0xac] sm:$0xf]  ;;  %v536_v48 = vld [vmem:[%s786_s0 + $0xb4] sm:$0xf0]  ;;  %v542_v49 = vld [vmem:[%s786_s0 + $0xb0] sm:$0xf]  ;;  %v457_v50 = vor.u32 %v554_v42, %v454_v44  ;;  %v461_v55 = vor.u32 %v556_v46, %v460_v45 }
   0xd   :  { %238 = vmatpush.bf16.msrb.mxu2 %v500_v29  ;;  %474 = vmatmul.msk.bf16.vlgmr.msra.gmra.mxu3 %vm62_vm0, %v646_v23  ;;  %v539_v51 = vor.u32 %v569_v47, %v536_v48  ;;  %v571_v52 = vld [vmem:[%s786_s0 + $0xb8] sm:$0xf0]  ;;  %v507_v53 = vld [vmem:[%s786_s0 + $0x80] sm:$0xf]  ;;  %v565_v54 = vld [vmem:[%s786_s0 + $0x88] sm:$0xf0] }
   0xe   :  { %252 = vmatpush.bf16.msrb.mxu3 %v504_v30  ;;  %169 = vmatpush.bf16.msrb.mxu0 %v469_v34  ;;  %v543_v56 = vor.u32 %v571_v52, %v542_v49  ;;  %v508_v57 = vor.u32 %v565_v54, %v507_v53  ;;  %v534_v58 = vld [vmem:[%s786_s0 + $0xa8] sm:$0xf]  ;;  %v570_v59 = vld [vmem:[%s786_s0 + $0xb0] sm:$0xf0]  ;;  %v524_v62 = vld [vmem:[%s786_s0 + $0x9c] sm:$0xf0] }
   0xf   :  { %183 = vmatpush.bf16.msrb.mxu1 %v473_v38  ;;  %v566_v60 = vld [vmem:[%s786_s0 + $0x94] sm:$0xf]  ;;  %v535_v61 = vor.u32 %v570_v59, %v534_v58  ;;  %v530_v63 = vld [vmem:[%s786_s0 + $0x98] sm:$0xf]  ;;  %v568_v0 = vld [vmem:[%s786_s0 + $0xa0] sm:$0xf0] }
  0x10   :  { %v527_v1 = vor.u32 %v566_v60, %v524_v62  ;;  %v531_v2 = vor.u32 %v568_v0, %v530_v63  ;;  %v495_v3 = vld [vmem:[%s786_s0 + $0x68] sm:$0xf]  ;;  %v562_v4 = vld [vmem:[%s786_s0 + $0x70] sm:$0xf0]  ;;  %v522_v5 = vld [vmem:[%s786_s0 + $0x90] sm:$0xf] }
  0x11   :  { %239 = vmatpush.bf16.msrb.mxu2 %v488_v39  ;;  %v567_v6 = vld [vmem:[%s786_s0 + $0x98] sm:$0xf0]  ;;  %v496_v7 = vor.u32 %v562_v4, %v495_v3  ;;  %v375_v8 = vld [vmem:[%s788_s2] sm:$0xff]  ;;  %v376_v11 = vld [vmem:[%s788_s2 + $0x8] sm:$0xff] }
  0x12   :  { %253 = vmatpush.bf16.msrb.mxu3 %v492_v43  ;;  %170 = vmatpush.bf16.msrb.mxu0 %v457_v50  ;;  %v523_v9 = vor.u32 %v567_v6, %v522_v5 }
  0x13   :  { %184 = vmatpush.bf16.msrb.mxu1 %v461_v55  ;;  %379 = vperm.xlu0 %573, %v375_v8  }
  0x15   :  { %335 = vmatpush.bf16.msra.mxu2 %v539_v51 }
  0x16   :  { %349 = vmatpush.bf16.msra.mxu3 %v543_v56  ;;  %266 = vmatpush.bf16.msra.mxu0 %v508_v57 }
  0x17   :  { %321 = vmatpush.bf16.msra.mxu1 %v535_v61 }
  0x19   :  { %336 = vmatpush.bf16.msra.mxu2 %v527_v1 }
  0x1a   :  { %350 = vmatpush.bf16.msra.mxu3 %v531_v2  ;;  %267 = vmatpush.bf16.msra.mxu0 %v496_v7 }
  0x1b   :  { %322 = vmatpush.bf16.msra.mxu1 %v523_v9  ;;  %475 = vmatmul.msk.bf16.vlgmr.msrb.gmra.mxu0 %vm62_vm0, %v646_v23 }
  0x1c   :  { %476 = vmatmul.msk.bf16.vlgmr.msrb.gmra.mxu1 %vm62_vm0, %v646_v23  ;;  %509 = vmatmul.msk.bf16.vlgmr.msrb.gmra.mxu2 %vm62_vm0, %v646_v23 }
  0x1d   :  { %510 = vmatmul.msk.bf16.vlgmr.msrb.gmra.mxu3 %vm62_vm0, %v646_v23  ;;  %384 = vperm.xlu0 %573, %v376_v11  }
  0x2b   :  { %511 = vmatmul.msk.bf16.vlgmr.msra.gmra.mxu0 %vm62_vm0, %v646_v23 }
  0x2c   :  { %544 = vmatmul.msk.bf16.vlgmr.msra.gmra.mxu1 %vm62_vm0, %v646_v23  ;;  %545 = vmatmul.msk.bf16.vlgmr.msra.gmra.mxu2 %vm62_vm0, %v646_v23 }
  0x2d   :  { %546 = vmatmul.msk.bf16.vlgmr.msra.gmra.mxu3 %vm62_vm0, %v646_v23 }
  0x85   :  { %v380_v33 = vpop.permute.xlu0 %379 }
  0x88   :  { %v75_v12 = vpop.f32.mrf.mxu0 }
  0x89   :  { %v89_v13 = vpop.f32.mrf.mxu1 }
  0x8f   :  { %v103_v14 = vpop.f32.mrf.mxu2  ;;  %v385_v60 = vpop.permute.xlu0 %384 }
  0x90   :  { %v158_v15 = vpop.f32.mrf.mxu3  ;;  %v77_v16 = vpop.f32.mrf.mxu0 }
  0x91   :  { %v91_v17 = vpop.f32.mrf.mxu1  ;;  %v357_v31 = vmax.f32 %v75_v12, %v158_v15 }
  0x97   :  { %v105_v18 = vpop.f32.mrf.mxu2 }
  0x98   :  { %v160_v19 = vpop.f32.mrf.mxu3  ;;  %v172_v21 = vpop.f32.mrf.mxu0 }
  0x99   :  { %v186_v20 = vpop.f32.mrf.mxu1  ;;  %v358_v35 = vmax.f32 %v89_v13, %v172_v21  ;;  %v360_v45 = vmax.f32 %v77_v16, %v160_v19 }
  0x9a   :  { %v359_v38 = vmax.f32 %v103_v14, %v186_v20 }
  0x9f   :  { %v241_v22 = vpop.f32.mrf.mxu2 }
  0xa0   :  { %v255_v24 = vpop.f32.mrf.mxu3  ;;  %v174_v26 = vpop.f32.mrf.mxu0 }
  0xa1   :  { %v188_v25 = vpop.f32.mrf.mxu1  ;;  %v361_v53 = vmax.f32 %v91_v17, %v174_v26 }
  0xa2   :  { %v362_v58 = vmax.f32 %v105_v18, %v188_v25 }
  0xa7   :  { %v243_v27 = vpop.f32.mrf.mxu2 }
  0xa8   :  { %v257_v28 = vpop.f32.mrf.mxu3  ;;  %v269_v23 = vpop.f32.mrf.mxu0 }
  0xa9   :  { %v324_v29 = vpop.f32.mrf.mxu1 }
  0xaa   :  { %v363_v30 = vmax.f32 %v241_v22, %v324_v29 }
  0xac   :  { %v369_v32 = vmax.f32 %v357_v31, %v363_v30 }
  0xae   :  { %v387_v41 = vadd.f32 %v380_v33, %v369_v32 }
  0xaf   :  { %v338_v34 = vpop.f32.mrf.mxu2 }
  0xb0   :  { %v364_v36 = vmax.f32 %v255_v24, %v338_v34  ;;  %v352_v37 = vpop.f32.mrf.mxu3  ;;  %v393_v48 = vmax.f32 %v387_v41, 0.0  ;;  %v271_v55 = vpop.f32.mrf.mxu0 }
  0xb1   :  { %v365_v39 = vmax.f32 %v269_v23, %v352_v37  ;;  %v326_v40 = vpop.f32.mrf.mxu1 }
  0xb2   :  { %v370_v42 = vmax.f32 %v358_v35, %v364_v36  ;;  %v366_v43 = vmax.f32 %v243_v27, %v326_v40 }
  0xb3   :  { %v371_v44 = vmax.f32 %v359_v38, %v365_v39 }
  0xb4   :  { %v388_v46 = vadd.f32 %v380_v33, %v370_v42  ;;  %v372_v50 = vmax.f32 %v360_v45, %v366_v43 }
  0xb5   :  { %v389_v47 = vadd.f32 %v380_v33, %v371_v44 }
  0xb6   :  { %v394_v49 = vmax.f32 %v388_v46, 0.0  ;;  %v390_v62 = vadd.f32 %v385_v60, %v372_v50 }
  0xb7   :  { %v395_v51 = vmax.f32 %v389_v47, 0.0  ;;  %v340_v52 = vpop.f32.mrf.mxu2 }
  0xb8   :  { %v399_v54 = vpack.c.bf16 %v394_v49, %v393_v48  ;;  %v367_v56 = vmax.f32 %v257_v28, %v340_v52  ;;  %v354_v57 = vpop.f32.mrf.mxu3  ;;  %v396_v3 = vmax.f32 %v390_v62, 0.0 }
  0xb9   :  { %v400_v59 = vpack.c.bf16 %v395_v51, %v395_v51  ;;  %v368_v61 = vmax.f32 %v271_v55, %v354_v57 }
  0xba   :  { %403 = vst [vmem:[%s789_s3] sm:$0xff] %v399_v54  ;;  %v373_v63 = vmax.f32 %v361_v53, %v367_v56 }
  0xbb   :  { %404 = vst [vmem:[%s789_s3 + $0x8] sm:$0xf] %v400_v59  ;;  %v374_v0 = vmax.f32 %v362_v58, %v368_v61 }
  0xbc   :  { %v391_v1 = vadd.f32 %v385_v60, %v373_v63 }
  0xbd   :  { %v392_v2 = vadd.f32 %v385_v60, %v374_v0 }
  0xbe   :  { %v397_v4 = vmax.f32 %v391_v1, 0.0 }
  0xbf   :  { %v398_v5 = vmax.f32 %v392_v2, 0.0 }
  0xc0   :  { %v401_v6 = vpack.c.bf16 %v397_v4, %v396_v3 }
  0xc1   :  { %v402_v7 = vpack.c.bf16 %v398_v5, %v398_v5 }
  0xc2   :  { %405 = vst [vmem:[%s789_s3 + $0xc] sm:$0xff] %v401_v6 }
  0xc3   :  { %406 = vst [vmem:[%s789_s3 + $0x14] sm:$0xf] %v402_v7 }

// kernel: net_forward.4
= control target key start
LH: loop header
LB: loop body
LE: loop exit
PB: predicated region body
PF: predicated region fallthrough
CT: control target
= control target key end

     0   :  { %s1478_s0 = inlined_call_operand.vmem [shape: bf16[4,256,128], index: 0, kind: input, shape index: {}]   ;;  %s1479_s1 = inlined_call_operand.vmem [shape: bf16[32,256], index: 1, kind: input, shape index: {}]   ;;  %s1480_s2 = inlined_call_operand.vmem [shape: f32[32,1], index: 2, kind: input, shape index: {}]   ;;  %s1481_s3 = inlined_call_operand.vmem [shape: bf16[32,128], index: 3, kind: output, shape index: {}]  }
   0x1   :  { %v1140_v0 = vld [vmem:[%s1478_s0 + $0x38] sm:$0xff]  ;;  %v1139_v4 = vld [vmem:[%s1478_s0 + $0x30] sm:$0xff]  ;;  %v1138_v8 = vld [vmem:[%s1478_s0 + $0x28] sm:$0xff] }
   0x2   :  { %v1148_v1 = vld [vmem:[%s1478_s0 + $0x78] sm:$0xff]  ;;  %166 = vmatpush.bf16.msra.mxu0 %v1140_v0  ;;  %v1147_v5 = vld [vmem:[%s1478_s0 + $0x70] sm:$0xff]  ;;  %v1146_v9 = vld [vmem:[%s1478_s0 + $0x68] sm:$0xff] }
   0x3   :  { %v1156_v2 = vld [vmem:[%s1478_s0 + $0xb8] sm:$0xff]  ;;  %185 = vmatpush.bf16.msra.mxu1 %v1148_v1  ;;  %v1155_v6 = vld [vmem:[%s1478_s0 + $0xb0] sm:$0xff]  ;;  %v1154_v10 = vld [vmem:[%s1478_s0 + $0xa8] sm:$0xff] }
   0x4   :  { %v1164_v3 = vld [vmem:[%s1478_s0 + $0xf8] sm:$0xff]  ;;  %333 = vmatpush.bf16.msra.mxu2 %v1156_v2  ;;  %v1163_v7 = vld [vmem:[%s1478_s0 + $0xf0] sm:$0xff]  ;;  %v1162_v11 = vld [vmem:[%s1478_s0 + $0xe8] sm:$0xff] }
   0x5   :  { %352 = vmatpush.bf16.msra.mxu3 %v1164_v3  ;;  %v1137_v12 = vld [vmem:[%s1478_s0 + $0x20] sm:$0xff]  ;;  %v1136_v16 = vld [vmem:[%s1478_s0 + $0x18] sm:$0xff]  ;;  %v1135_v20 = vld [vmem:[%s1478_s0 + $0x10] sm:$0xff] }
   0x6   :  { %167 = vmatpush.bf16.msra.mxu0 %v1139_v4  ;;  %v1145_v13 = vld [vmem:[%s1478_s0 + $0x60] sm:$0xff]  ;;  %v1144_v17 = vld [vmem:[%s1478_s0 + $0x58] sm:$0xff]  ;;  %v1143_v21 = vld [vmem:[%s1478_s0 + $0x50] sm:$0xff] }
   0x7   :  { %186 = vmatpush.bf16.msra.mxu1 %v1147_v5  ;;  %v1153_v14 = vld [vmem:[%s1478_s0 + $0xa0] sm:$0xff]  ;;  %v1152_v18 = vld [vmem:[%s1478_s0 + $0x98] sm:$0xff]  ;;  %v1151_v22 = vld [vmem:[%s1478_s0 + $0x90] sm:$0xff] }
   0x8   :  { %334 = vmatpush.bf16.msra.mxu2 %v1155_v6  ;;  %v1161_v15 = vld [vmem:[%s1478_s0 + $0xe0] sm:$0xff]  ;;  %v1160_v19 = vld [vmem:[%s1478_s0 + $0xd8] sm:$0xff]  ;;  %v1159_v23 = vld [vmem:[%s1478_s0 + $0xd0] sm:$0xff] }
   0x9   :  { %353 = vmatpush.bf16.msra.mxu3 %v1163_v7  ;;  %v1134_v24 = vld [vmem:[%s1478_s0 + $0x8] sm:$0xff]  ;;  %v1133_v28 = vld [vmem:[%s1478_s0] sm:$0xff]  ;;  %v1188_v36 = vld [vmem:[%s1478_s0 + $0x1b8] sm:$0xff] }
   0xa   :  { %168 = vmatpush.bf16.msra.mxu0 %v1138_v8  ;;  %v1142_v25 = vld [vmem:[%s1478_s0 + $0x48] sm:$0xff]  ;;  %v1141_v29 = vld [vmem:[%s1478_s0 + $0x40] sm:$0xff]  ;;  %v1196_v37 = vld [vmem:[%s1478_s0 + $0x1f8] sm:$0xff]  ;;  %v1211_v8 = vmov 0  }
   0xb   :  { %187 = vmatpush.bf16.msra.mxu1 %v1146_v9  ;;  %v1150_v26 = vld [vmem:[%s1478_s0 + $0x88] sm:$0xff]  ;;  %v763_v30 = vld [vmem:[%s1479_s1] sm:$0xf]  ;;  %v1129_v32 = vld [vmem:[%s1479_s1 + $0x4] sm:$0xf]  ;;  %1209 = vset.pattern.permute.xlu0 %v1211_v8 }
   0xc   :  { %335 = vmatpush.bf16.msra.mxu2 %v1154_v10  ;;  %v1158_v27 = vld [vmem:[%s1478_s0 + $0xc8] sm:$0xff]  ;;  %v1149_v34 = vld [vmem:[%s1478_s0 + $0x80] sm:$0xff]  ;;  %v1172_v40 = vld [vmem:[%s1478_s0 + $0x138] sm:$0xff]  ;;  %1210 = vset.pattern.permute.xlu1 %v1211_v8 }
   0xd   :  { %354 = vmatpush.bf16.msra.mxu3 %v1162_v11  ;;  %v1130_v31 = vld [vmem:[%s1479_s1 + $0x4] sm:$0xf0]  ;;  %v765_v33 = vld [vmem:[%s1479_s1 + $0x8] sm:$0xf0]  ;;  %v1157_v35 = vld [vmem:[%s1478_s0 + $0xc0] sm:$0xff] }
   0xe   :  { %169 = vmatpush.bf16.msra.mxu0 %v1137_v12  ;;  %v1346_v38 = vor.u32 %v1130_v31, %v763_v30  ;;  %v1348_v39 = vor.u32 %v1129_v32, %v765_v33  ;;  %v1180_v41 = vld [vmem:[%s1478_s0 + $0x178] sm:$0xff]  ;;  %v1187_v42 = vld [vmem:[%s1478_s0 + $0x1b0] sm:$0xff]  ;;  %v1186_v46 = vld [vmem:[%s1478_s0 + $0x1a8] sm:$0xff] }
   0xf   :  { %188 = vmatpush.bf16.msra.mxu1 %v1145_v13  ;;  %v1195_v43 = vld [vmem:[%s1478_s0 + $0x1f0] sm:$0xff]  ;;  %v1194_v47 = vld [vmem:[%s1478_s0 + $0x1e8] sm:$0xff]  ;;  %v1185_v50 = vld [vmem:[%s1478_s0 + $0x1a0] sm:$0xff] }
  0x10   :  { %336 = vmatpush.bf16.msra.mxu2 %v1153_v14  ;;  %v1171_v44 = vld [vmem:[%s1478_s0 + $0x130] sm:$0xff]  ;;  %v1170_v48 = vld [vmem:[%s1478_s0 + $0x128] sm:$0xff]  ;;  %v1193_v51 = vld [vmem:[%s1478_s0 + $0x1e0] sm:$0xff] }
  0x11   :  { %355 = vmatpush.bf16.msra.mxu3 %v1161_v15  ;;  %v1179_v45 = vld [vmem:[%s1478_s0 + $0x170] sm:$0xff]  ;;  %v1178_v49 = vld [vmem:[%s1478_s0 + $0x168] sm:$0xff]  ;;  %v1132_v53 = vld [vmem:[%s1479_s1 + $0x14] sm:$0xf0] }
  0x12   :  { %170 = vmatpush.bf16.msra.mxu0 %v1136_v16  ;;  %v771_v52 = vld [vmem:[%s1479_s1 + $0x10] sm:$0xf]  ;;  %v1131_v54 = vld [vmem:[%s1479_s1 + $0x14] sm:$0xf]  ;;  %v773_v55 = vld [vmem:[%s1479_s1 + $0x18] sm:$0xf0] }
  0x13   :  { %189 = vmatpush.bf16.msra.mxu1 %v1144_v17  ;;  %v1169_v56 = vld [vmem:[%s1478_s0 + $0x120] sm:$0xff]  ;;  %v1184_v58 = vld [vmem:[%s1478_s0 + $0x198] sm:$0xff]  ;;  %v772_v60 = vor.u32 %v1132_v53, %v771_v52  ;;  %v776_v61 = vor.u32 %v1131_v54, %v773_v55  ;;  %v1183_v0 = vld [vmem:[%s1478_s0 + $0x190] sm:$0xff] }
  0x14   :  { %337 = vmatpush.bf16.msra.mxu2 %v1152_v18  ;;  %v1177_v57 = vld [vmem:[%s1478_s0 + $0x160] sm:$0xff]  ;;  %v1192_v59 = vld [vmem:[%s1478_s0 + $0x1d8] sm:$0xff]  ;;  %v1191_v1 = vld [vmem:[%s1478_s0 + $0x1d0] sm:$0xff] }
  0x15   :  { %356 = vmatpush.bf16.msra.mxu3 %v1160_v19  ;;  %v1168_v62 = vld [vmem:[%s1478_s0 + $0x118] sm:$0xff]  ;;  %v1167_v2 = vld [vmem:[%s1478_s0 + $0x110] sm:$0xff]  ;;  %v717_v4 = vld [vmem:[%s1480_s2] sm:$0xff] }
  0x16   :  { %171 = vmatpush.bf16.msra.mxu0 %v1135_v20  ;;  %v1176_v63 = vld [vmem:[%s1478_s0 + $0x158] sm:$0xff]  ;;  %v1175_v3 = vld [vmem:[%s1478_s0 + $0x150] sm:$0xff]  ;;  %v1182_v6 = vld [vmem:[%s1478_s0 + $0x188] sm:$0xff]  ;;  %723 = vperm.xlu0 %1209, %v717_v4  }
  0x17   :  { %190 = vmatpush.bf16.msra.mxu1 %v1143_v21  ;;  %v719_v5 = vld [vmem:[%s1480_s2 + $0x10] sm:$0xff]  ;;  %v1190_v7 = vld [vmem:[%s1478_s0 + $0x1c8] sm:$0xff]  ;;  %v1181_v11 = vld [vmem:[%s1478_s0 + $0x180] sm:$0xff] }
  0x18   :  { %338 = vmatpush.bf16.msra.mxu2 %v1151_v22  ;;  %733 = vperm.xlu1 %1210, %v719_v5   ;;  %v1166_v9 = vld [vmem:[%s1478_s0 + $0x108] sm:$0xff]  ;;  %v1189_v12 = vld [vmem:[%s1478_s0 + $0x1c0] sm:$0xff]  ;;  %v720_v16 = vld [vmem:[%s1480_s2 + $0x18] sm:$0xff] }
  0x19   :  { %357 = vmatpush.bf16.msra.mxu3 %v1159_v23  ;;  %v1174_v10 = vld [vmem:[%s1478_s0 + $0x148] sm:$0xff]  ;;  %v1165_v13 = vld [vmem:[%s1478_s0 + $0x100] sm:$0xff] }
  0x1a   :  { %172 = vmatpush.bf16.msra.mxu0 %v1134_v24  ;;  %v1173_v14 = vld [vmem:[%s1478_s0 + $0x140] sm:$0xff]  ;;  %v718_v15 = vld [vmem:[%s1480_s2 + $0x8] sm:$0xff] }
  0x1b   :  { %191 = vmatpush.bf16.msra.mxu1 %v1142_v25 }
  0x1c   :  { %339 = vmatpush.bf16.msra.mxu2 %v1150_v26 }
  0x1d   :  { %358 = vmatpush.bf16.msra.mxu3 %v1158_v27 }
  0x1e   :  { %173 = vmatpush.bf16.msra.mxu0 %v1133_v28  ;;  %728 = vperm.xlu0 %1209, %v718_v15  }
  0x1f   :  { %192 = vmatpush.bf16.msra.mxu1 %v1141_v29 }
  0x20   :  { %340 = vmatpush.bf16.msra.mxu2 %v1149_v34  ;;  %738 = vperm.xlu1 %1210, %v720_v16  }
  0x21   :  { %359 = vmatpush.bf16.msra.mxu3 %v1157_v35  ;;  %174 = vmatmul.bf16.vlgmr.msra.gmra.mxu0 %v1346_v38 }
  0x22   :  { %193 = vmatmul.bf16.vlgmr.msra.gmra.mxu1 %v1348_v39  ;;  %500 = vmatpush.bf16.msrb.mxu0 %v1172_v40 }
  0x23   :  { %341 = vmatmul.bf16.vlgmr.msra.gmra.mxu2 %v1346_v38  ;;  %519 = vmatpush.bf16.msrb.mxu1 %v1180_v41 }
  0x24   :  { %667 = vmatpush.bf16.msrb.mxu2 %v1188_v36  ;;  %360 = vmatmul.bf16.vlgmr.msra.gmra.mxu3 %v1348_v39 }
  0x25   :  { %686 = vmatpush.bf16.msrb.mxu3 %v1196_v37 }
  0x26   :  { %501 = vmatpush.bf16.msrb.mxu0 %v1171_v44 }
  0x27   :  { %520 = vmatpush.bf16.msrb.mxu1 %v1179_v45 }
  0x28   :  { %668 = vmatpush.bf16.msrb.mxu2 %v1187_v42 }
  0x29   :  { %687 = vmatpush.bf16.msrb.mxu3 %v1195_v43 }
  0x2a   :  { %502 = vmatpush.bf16.msrb.mxu0 %v1170_v48 }
  0x2b   :  { %521 = vmatpush.bf16.msrb.mxu1 %v1178_v49 }
  0x2c   :  { %669 = vmatpush.bf16.msrb.mxu2 %v1186_v46 }
  0x2d   :  { %688 = vmatpush.bf16.msrb.mxu3 %v1194_v47 }
  0x2e   :  { %503 = vmatpush.bf16.msrb.mxu0 %v1169_v56 }
  0x2f   :  { %522 = vmatpush.bf16.msrb.mxu1 %v1177_v57 }
  0x30   :  { %670 = vmatpush.bf16.msrb.mxu2 %v1185_v50 }
  0x31   :  { %689 = vmatpush.bf16.msrb.mxu3 %v1193_v51  ;;  %179 = vmatmul.bf16.gmra.mxu0 %v772_v60 }
  0x32   :  { %198 = vmatmul.bf16.gmra.mxu1 %v776_v61  ;;  %504 = vmatpush.bf16.msrb.mxu0 %v1168_v62 }
  0x33   :  { %346 = vmatmul.bf16.gmra.mxu2 %v772_v60  ;;  %523 = vmatpush.bf16.msrb.mxu1 %v1176_v63 }
  0x34   :  { %671 = vmatpush.bf16.msrb.mxu2 %v1184_v58  ;;  %365 = vmatmul.bf16.gmra.mxu3 %v776_v61 }
  0x35   :  { %690 = vmatpush.bf16.msrb.mxu3 %v1192_v59 }
  0x36   :  { %505 = vmatpush.bf16.msrb.mxu0 %v1167_v2 }
  0x37   :  { %524 = vmatpush.bf16.msrb.mxu1 %v1175_v3 }
  0x38   :  { %672 = vmatpush.bf16.msrb.mxu2 %v1183_v0 }
  0x39   :  { %691 = vmatpush.bf16.msrb.mxu3 %v1191_v1 }
  0x3a   :  { %506 = vmatpush.bf16.msrb.mxu0 %v1166_v9 }
  0x3b   :  { %525 = vmatpush.bf16.msrb.mxu1 %v1174_v10 }
  0x3c   :  { %673 = vmatpush.bf16.msrb.mxu2 %v1182_v6 }
  0x3d   :  { %692 = vmatpush.bf16.msrb.mxu3 %v1190_v7 }
  0x3e   :  { %507 = vmatpush.bf16.msrb.mxu0 %v1165_v13 }
  0x3f   :  { %526 = vmatpush.bf16.msrb.mxu1 %v1173_v14 }
  0x40   :  { %674 = vmatpush.bf16.msrb.mxu2 %v1181_v11 }
  0x41   :  { %693 = vmatpush.bf16.msrb.mxu3 %v1189_v12  ;;  %508 = vmatmul.bf16.vlgmr.msrb.gmra.mxu0 %v1346_v38 }
  0x42   :  { %527 = vmatmul.bf16.vlgmr.msrb.gmra.mxu1 %v1348_v39 }
  0x43   :  { %675 = vmatmul.bf16.vlgmr.msrb.gmra.mxu2 %v1346_v38 }
  0x44   :  { %694 = vmatmul.bf16.vlgmr.msrb.gmra.mxu3 %v1348_v39 }
  0x51   :  { %513 = vmatmul.bf16.gmra.mxu0 %v772_v60 }
  0x52   :  { %532 = vmatmul.bf16.gmra.mxu1 %v776_v61 }
  0x53   :  { %680 = vmatmul.bf16.gmra.mxu2 %v772_v60 }
  0x54   :  { %699 = vmatmul.bf16.gmra.mxu3 %v776_v61 }
  0x88   :  { %v724_v39 = vpop.permute.xlu0 %723 }
  0x8a   :  { %v734_v6 = vpop.permute.xlu1 %733 }
  0x90   :  { %v729_v55 = vpop.permute.xlu0 %728 }
  0x9e   :  { %v175_v17 = vpop.f32.mrf.mxu0 }
  0x9f   :  { %v194_v18 = vpop.f32.mrf.mxu1 }
  0xa0   :  { %v195_v42 = vadd.f32 %v194_v18, %v175_v17 }
  0xa6   :  { %v342_v19 = vpop.f32.mrf.mxu2  ;;  %v177_v21 = vpop.f32.mrf.mxu0 }
  0xa7   :  { %v361_v20 = vpop.f32.mrf.mxu3  ;;  %v196_v22 = vpop.f32.mrf.mxu1 }
  0xa8   :  { %v362_v43 = vadd.f32 %v361_v20, %v342_v19  ;;  %v197_v49 = vadd.f32 %v196_v22, %v177_v21  ;;  %v739_v22 = vpop.permute.xlu1 %738 }
  0xaa   :  { %v705_v45 = vmax.f32 %v195_v42, %v362_v43 }
  0xae   :  { %v344_v23 = vpop.f32.mrf.mxu2  ;;  %v180_v25 = vpop.f32.mrf.mxu0 }
  0xaf   :  { %v363_v24 = vpop.f32.mrf.mxu3  ;;  %v199_v26 = vpop.f32.mrf.mxu1 }
  0xb0   :  { %v364_v46 = vadd.f32 %v363_v24, %v344_v23  ;;  %v200_v3 = vadd.f32 %v199_v26, %v180_v25 }
  0xb2   :  { %v706_v53 = vmax.f32 %v197_v49, %v364_v46 }
  0xb6   :  { %v347_v27 = vpop.f32.mrf.mxu2  ;;  %v182_v29 = vpop.f32.mrf.mxu0 }
  0xb7   :  { %v366_v28 = vpop.f32.mrf.mxu3  ;;  %v201_v30 = vpop.f32.mrf.mxu1 }
  0xb8   :  { %v367_v4 = vadd.f32 %v366_v28, %v347_v27  ;;  %v202_v14 = vadd.f32 %v201_v30, %v182_v29 }
  0xba   :  { %v707_v10 = vmax.f32 %v200_v3, %v367_v4 }
  0xbe   :  { %v349_v31 = vpop.f32.mrf.mxu2  ;;  %v509_v33 = vpop.f32.mrf.mxu0 }
  0xbf   :  { %v368_v32 = vpop.f32.mrf.mxu3  ;;  %v528_v34 = vpop.f32.mrf.mxu1 }
  0xc0   :  { %v529_v37 = vadd.f32 %v528_v34, %v509_v33  ;;  %v369_v11 = vadd.f32 %v368_v32, %v349_v31 }
  0xc2   :  { %v708_v18 = vmax.f32 %v202_v14, %v369_v11 }
  0xc6   :  { %v676_v35 = vpop.f32.mrf.mxu2  ;;  %v511_v40 = vpop.f32.mrf.mxu0 }
  0xc7   :  { %v695_v36 = vpop.f32.mrf.mxu3  ;;  %v530_v41 = vpop.f32.mrf.mxu1 }
  0xc8   :  { %v696_v38 = vadd.f32 %v695_v36, %v676_v35  ;;  %v531_v50 = vadd.f32 %v530_v41, %v511_v40 }
  0xca   :  { %v709_v44 = vmax.f32 %v529_v37, %v696_v38 }
  0xcc   :  { %v713_v51 = vmax.f32 %v705_v45, %v709_v44 }
  0xce   :  { %v678_v47 = vpop.f32.mrf.mxu2  ;;  %v514_v56 = vpop.f32.mrf.mxu0  ;;  %v741_v58 = vadd.f32 %v724_v39, %v713_v51 }
  0xcf   :  { %v697_v48 = vpop.f32.mrf.mxu3  ;;  %v533_v57 = vpop.f32.mrf.mxu1 }
  0xd0   :  { %v698_v52 = vadd.f32 %v697_v48, %v678_v47  ;;  %v745_v63 = vmax.f32 %v741_v58, 0.0  ;;  %v534_v0 = vadd.f32 %v533_v57, %v514_v56 }
  0xd2   :  { %v710_v54 = vmax.f32 %v531_v50, %v698_v52 }
  0xd4   :  { %v714_v59 = vmax.f32 %v706_v53, %v710_v54 }
  0xd6   :  { %v742_v60 = vadd.f32 %v729_v55, %v714_v59  ;;  %v681_v61 = vpop.f32.mrf.mxu2  ;;  %v516_v8 = vpop.f32.mrf.mxu0 }
  0xd7   :  { %v700_v62 = vpop.f32.mrf.mxu3  ;;  %v535_v9 = vpop.f32.mrf.mxu1 }
  0xd8   :  { %v746_v1 = vmax.f32 %v742_v60, 0.0  ;;  %v701_v2 = vadd.f32 %v700_v62, %v681_v61  ;;  %v536_v16 = vadd.f32 %v535_v9, %v516_v8 }
  0xda   :  { %v1200_v5 = vpack.c.bf16 %v746_v1, %v745_v63  ;;  %v711_v7 = vmax.f32 %v534_v0, %v701_v2 }
  0xdc   :  { %1201 = vst [vmem:[%s1481_s3] sm:$0xff] %v1200_v5   ;;  %v715_v15 = vmax.f32 %v707_v10, %v711_v7 }
  0xde   :  { %v683_v12 = vpop.f32.mrf.mxu2  ;;  %v743_v20 = vadd.f32 %v734_v6, %v715_v15 }
  0xdf   :  { %v702_v13 = vpop.f32.mrf.mxu3 }
  0xe0   :  { %v703_v17 = vadd.f32 %v702_v13, %v683_v12  ;;  %v747_v24 = vmax.f32 %v743_v20, 0.0 }
  0xe2   :  { %v712_v19 = vmax.f32 %v536_v16, %v703_v17 }
  0xe4   :  { %v716_v21 = vmax.f32 %v708_v18, %v712_v19 }
  0xe6   :  { %v744_v23 = vadd.f32 %v739_v22, %v716_v21 }
  0xe8   :  { %v748_v25 = vmax.f32 %v744_v23, 0.0 }
  0xea   :  { %v1205_v26 = vpack.c.bf16 %v748_v25, %v747_v24 }
  0xec   :  { %1207 = vst [vmem:[%s1481_s3 + $0x8] sm:$0xff] %v1205_v26  }

// kernel: net_forward.5
= control target key start
LH: loop header
LB: loop body
LE: loop exit
PB: predicated region body
PF: predicated region fallthrough
CT: control target
= control target key end

     0   :  { %v673_v2 = vmov 0   ;;  %vm305_vm0 = vcmask 523264   ;;  %vm456_vm1 = vcmask 1041408   ;;  %s889_s0 = inlined_call_operand.vmem [shape: bf16[320,128], index: 0, kind: input, shape index: {}]   ;;  %s890_s2 = inlined_call_operand.vmem [shape: f32[64,1], index: 2, kind: input, shape index: {}]   ;;  %s891_s1 = inlined_call_operand.vmem [shape: bf16[64,320], index: 1, kind: input, shape index: {}]   ;;  %s892_s4 = inlined_call_operand.vmem [shape: f32[10,1], index: 4, kind: input, shape index: {}]   ;;  %s893_s3 = inlined_call_operand.vmem [shape: f32[10,64], index: 3, kind: input, shape index: {}]   ;;  %s894_s5 = inlined_call_operand.vmem [shape: f32[10,128], index: 5, kind: output, shape index: {}]  }
   0x1   :  { %v642_v0 = vld [vmem:[%s889_s0 + $0x38] sm:$0xff]  ;;  %665 = vset.pattern.permute.xlu1 %v673_v2  ;;  %664 = vset.pattern.permute.xlu0 %v673_v2  ;;  %v641_v4 = vld [vmem:[%s889_s0 + $0x30] sm:$0xff]  ;;  %v640_v7 = vld [vmem:[%s889_s0 + $0x28] sm:$0xff] }
   0x2   :  { %v650_v1 = vld [vmem:[%s889_s0 + $0x78] sm:$0xff]  ;;  %666 = vset.pattern.permute.xlu2 %v673_v2  ;;  %318 = vmatpush.bf16.msra.mxu0 %v642_v0  ;;  %v649_v5 = vld [vmem:[%s889_s0 + $0x70] sm:$0xff]  ;;  %v648_v8 = vld [vmem:[%s889_s0 + $0x68] sm:$0xff] }
   0x3   :  { %v654_v3 = vld [vmem:[%s889_s0 + $0x98] sm:$0xff]  ;;  %347 = vmatpush.bf16.msra.mxu1 %v650_v1  ;;  %v653_v6 = vld [vmem:[%s889_s0 + $0x90] sm:$0xff]  ;;  %655 = vmatpush.bf16.msra.mxu3 %v642_v0  ;;  %v82_v9 = vld [vmem:[%s890_s2 + $0x28] sm:$0xff] }
   0x4   :  { %380 = vmatpush.bf16.msra.mxu2 %v654_v3  ;;  %v652_v10 = vld [vmem:[%s889_s0 + $0x88] sm:$0xff]  ;;  %112 = vperm.xlu1 %665, %v82_v9   ;;  %v84_v11 = vld [vmem:[%s890_s2 + $0x38] sm:$0xff]  ;;  %v639_v12 = vld [vmem:[%s889_s0 + $0x20] sm:$0xff] }
   0x5   :  { %v647_v13 = vld [vmem:[%s889_s0 + $0x60] sm:$0xff]  ;;  %122 = vperm.xlu0 %664, %v84_v11   ;;  %v499_v15 = vld [vmem:[%s891_s1 + $0x8] sm:$0xf]  ;;  %v625_v16 = vld [vmem:[%s891_s1 + $0x10] sm:$0xf0] }
   0x6   :  { %319 = vmatpush.bf16.msra.mxu0 %v641_v4  ;;  %v651_v14 = vld [vmem:[%s889_s0 + $0x80] sm:$0xff]  ;;  %v638_v18 = vld [vmem:[%s889_s0 + $0x18] sm:$0xff]  ;;  %v500_v20 = vor.u32 %v625_v16, %v499_v15  ;;  %v83_v21 = vld [vmem:[%s890_s2 + $0x30] sm:$0xff] }
   0x7   :  { %348 = vmatpush.bf16.msra.mxu1 %v649_v5  ;;  %656 = vmatpush.bf16.msra.mxu3 %v641_v4  ;;  %v81_v17 = vld [vmem:[%s890_s2 + $0x20] sm:$0xff]  ;;  %v646_v19 = vld [vmem:[%s889_s0 + $0x58] sm:$0xff]  ;;  %v637_v22 = vld [vmem:[%s889_s0 + $0x10] sm:$0xff] }
   0x8   :  { %381 = vmatpush.bf16.msra.mxu2 %v653_v6  ;;  %v645_v23 = vld [vmem:[%s889_s0 + $0x50] sm:$0xff]  ;;  %v77_v24 = vld [vmem:[%s890_s2] sm:$0xff]  ;;  %v636_v25 = vld [vmem:[%s889_s0 + $0x8] sm:$0xff] }
   0x9   :  { %v644_v26 = vld [vmem:[%s889_s0 + $0x48] sm:$0xff]  ;;  %v635_v28 = vld [vmem:[%s889_s0] sm:$0xff]  ;;  %v493_v33 = vld [vmem:[%s891_s1 + $0xc] sm:$0xf0] }
   0xa   :  { %320 = vmatpush.bf16.msra.mxu0 %v640_v7  ;;  %v78_v27 = vld [vmem:[%s890_s2 + $0x8] sm:$0xff]  ;;  %v643_v29 = vld [vmem:[%s889_s0 + $0x40] sm:$0xff]  ;;  %v633_v39 = vld [vmem:[%s891_s1 + $0x50] sm:$0xf0] }
   0xb   :  { %349 = vmatpush.bf16.msra.mxu1 %v648_v8  ;;  %657 = vmatpush.bf16.msra.mxu3 %v640_v7  ;;  %v491_v30 = vld [vmem:[%s891_s1] sm:$0xf]  ;;  %v624_v31 = vld [vmem:[%s891_s1 + $0x8] sm:$0xf0]  ;;  %v623_v32 = vld [vmem:[%s891_s1 + $0x4] sm:$0xf] }
   0xc   :  { %382 = vmatpush.bf16.msra.mxu2 %v652_v10  ;;  %107 = vperm.xlu1 %665, %v81_v17   ;;  %v511_v34 = vld [vmem:[%s891_s1 + $0x20] sm:$0xf]  ;;  %v628_v35 = vld [vmem:[%s891_s1 + $0x28] sm:$0xf0]  ;;  %v492_v36 = vor.u32 %v624_v31, %v491_v30  ;;  %v496_v37 = vor.u32 %v623_v32, %v493_v33  ;;  %v527_v38 = vld [vmem:[%s891_s1 + $0x48] sm:$0xf] }
   0xd   :  { %117 = vperm.xlu0 %664, %v83_v21   ;;  %v512_v40 = vor.u32 %v628_v35, %v511_v34  ;;  %v528_v41 = vor.u32 %v633_v39, %v527_v38  ;;  %v80_v42 = vld [vmem:[%s890_s2 + $0x18] sm:$0xff]  ;;  %v627_v44 = vld [vmem:[%s891_s1 + $0x20] sm:$0xf0]  ;;  %v505_v46 = vld [vmem:[%s891_s1 + $0x24] sm:$0xf0] }
   0xe   :  { %321 = vmatpush.bf16.msra.mxu0 %v639_v12  ;;  %102 = vperm.xlu2 %666, %v80_v42   ;;  %v503_v43 = vld [vmem:[%s891_s1 + $0x18] sm:$0xf]  ;;  %v626_v45 = vld [vmem:[%s891_s1 + $0x1c] sm:$0xf]  ;;  %v631_v48 = vld [vmem:[%s891_s1 + $0x40] sm:$0xf0] }
   0xf   :  { %350 = vmatpush.bf16.msra.mxu1 %v647_v13  ;;  %658 = vmatpush.bf16.msra.mxu3 %v639_v12  ;;  %v523_v47 = vld [vmem:[%s891_s1 + $0x38] sm:$0xf]  ;;  %v504_v49 = vor.u32 %v627_v44, %v503_v43  ;;  %v508_v50 = vor.u32 %v626_v45, %v505_v46  ;;  %v79_v52 = vld [vmem:[%s890_s2 + $0x10] sm:$0xff]  ;;  %v415_v53 = vld [vmem:[%s892_s4] sm:$0xff] }
  0x10   :  { %383 = vmatpush.bf16.msra.mxu2 %v651_v14  ;;  %v524_v51 = vor.u32 %v631_v48, %v523_v47  ;;  %v416_v54 = vld [vmem:[%s892_s4 + $0x8] sm:$0x3]  ;;  %v515_v55 = vld [vmem:[%s891_s1 + $0x30] sm:$0xf]  ;;  %v630_v56 = vld [vmem:[%s891_s1 + $0x38] sm:$0xf0] }
  0x11   :  { %v629_v57 = vld [vmem:[%s891_s1 + $0x34] sm:$0xf]  ;;  %v517_v58 = vld [vmem:[%s891_s1 + $0x3c] sm:$0xf0]  ;;  %v535_v59 = vld [vmem:[%s891_s1 + $0x50] sm:$0xf]  ;;  %v516_v61 = vor.u32 %v630_v56, %v515_v55 }
  0x12   :  { %322 = vmatpush.bf16.msra.mxu0 %v638_v18  ;;  %v634_v60 = vld [vmem:[%s891_s1 + $0x58] sm:$0xf0]  ;;  %v520_v62 = vor.u32 %v629_v57, %v517_v58  ;;  %v632_v0 = vld [vmem:[%s891_s1 + $0x4c] sm:$0xf]  ;;  %v529_v1 = vld [vmem:[%s891_s1 + $0x54] sm:$0xf0] }
  0x13   :  { %351 = vmatpush.bf16.msra.mxu1 %v646_v19  ;;  %617 = vmatmul.msk.bf16.vlgmr.msra.gmra.mxu2 %vm305_vm0, %v500_v20  ;;  %v536_v63 = vor.u32 %v634_v60, %v535_v59  ;;  %v532_v2 = vor.u32 %v632_v0, %v529_v1 }
  0x14   :  { %659 = vmatpush.bf16.msra.mxu3 %v638_v18  ;;  %87 = vperm.xlu1 %665, %v77_v24  }
  0x15   :  { %92 = vperm.xlu0 %664, %v78_v27  }
  0x16   :  { %323 = vmatpush.bf16.msra.mxu0 %v637_v22  ;;  %97 = vperm.xlu2 %666, %v79_v52  }
  0x17   :  { %352 = vmatpush.bf16.msra.mxu1 %v645_v23 }
  0x18   :  { %660 = vmatpush.bf16.msra.mxu3 %v637_v22 }
  0x1a   :  { %324 = vmatpush.bf16.msra.mxu0 %v636_v25 }
  0x1b   :  { %353 = vmatpush.bf16.msra.mxu1 %v644_v26 }
  0x1c   :  { %661 = vmatpush.bf16.msra.mxu3 %v636_v25 }
  0x1d   :  { %419 = vperm.xlu0 %664, %v415_v53  }
  0x1e   :  { %325 = vmatpush.bf16.msra.mxu0 %v635_v28  ;;  %424 = vperm.xlu2 %666, %v416_v54  }
  0x1f   :  { %354 = vmatpush.bf16.msra.mxu1 %v643_v29 }
  0x20   :  { %662 = vmatpush.bf16.msra.mxu3 %v635_v28 }
  0x21   :  { %326 = vmatmul.bf16.vlgmr.msra.gmra.mxu0 %v492_v36 }
  0x22   :  { %355 = vmatmul.bf16.vlgmr.msra.gmra.mxu1 %v496_v37 }
  0x23   :  { %618 = vmatmul.msk.bf16.gmra.mxu2 %vm305_vm0, %v512_v40  ;;  %341 = vmatmul.bf16.vlgmr.msra.gmra.mxu3 %v528_v41 }
  0x31   :  { %331 = vmatmul.bf16.gmra.mxu0 %v504_v49 }
  0x32   :  { %360 = vmatmul.bf16.gmra.mxu1 %v508_v50 }
  0x33   :  { %619 = vmatmul.msk.bf16.gmra.mxu2 %vm305_vm0, %v524_v51 }
  0x41   :  { %336 = vmatmul.bf16.gmra.mxu0 %v516_v61 }
  0x42   :  { %365 = vmatmul.bf16.gmra.mxu1 %v520_v62 }
  0x43   :  { %620 = vmatmul.msk.bf16.gmra.mxu2 %vm305_vm0, %v536_v63 }
  0x52   :  { %370 = vmatmul.bf16.gmra.mxu1 %v532_v2 }
  0x68   :  { %v103_v28 = vpop.permute.xlu2 %102 }
  0x70   :  { %v98_v39 = vpop.permute.xlu2 %97 }
  0x76   :  { %v113_v3 = vpop.permute.xlu1 %112 }
  0x77   :  { %v123_v23 = vpop.permute.xlu0 %122 }
  0x7e   :  { %v108_v4 = vpop.permute.xlu1 %107 }
  0x7f   :  { %v118_v29 = vpop.permute.xlu0 %117 }
  0x86   :  { %v88_v6 = vpop.permute.xlu1 %87 }
  0x87   :  { %v93_v44 = vpop.permute.xlu0 %92 }
  0x96   :  { %v385_v5 = vpop.f32.mrf.mxu2 }
  0x9e   :  { %v327_v7 = vpop.f32.mrf.mxu0  ;;  %v387_v10 = vpop.f32.mrf.mxu2 }
  0x9f   :  { %v356_v8 = vpop.f32.mrf.mxu1  ;;  %v328_v9 = vadd.f32 %v327_v7, %v88_v6  ;;  %v425_v6 = vpop.permute.xlu2 %424 }
  0xa1   :  { %v357_v11 = vadd.f32 %v356_v8, %v328_v9  ;;  %v420_v8 = vpop.permute.xlu0 %419 }
  0xa3   :  { %v870_v12 = vadd.f32 %v385_v5, %v357_v11 }
  0xa5   :  { %v405_v2 = vmax.f32 %v870_v12, 0.0 }
  0xa6   :  { %v390_v14 = vpop.f32.mrf.mxu2  ;;  %v329_v15 = vpop.f32.mrf.mxu0 }
  0xa7   :  { %v358_v13 = vpop.f32.mrf.mxu1  ;;  %v342_v27 = vpop.f32.mrf.mxu3  ;;  %v330_v50 = vadd.f32 %v329_v15, %v93_v44 }
  0xa8   :  { %v343_v33 = vadd.f32 %v342_v27, %v118_v29 }
  0xa9   :  { %v359_v57 = vadd.f32 %v358_v13, %v330_v50 }
  0xab   :  { %v388_v63 = vadd.f32 %v387_v10, %v359_v57 }
  0xad   :  { %v406_v1 = vmax.f32 %v388_v63, 0.0 }
  0xae   :  { %v392_v17 = vpop.f32.mrf.mxu2  ;;  %v332_v18 = vpop.f32.mrf.mxu0 }
  0xaf   :  { %v361_v16 = vpop.f32.mrf.mxu1  ;;  %v344_v34 = vpop.f32.mrf.mxu3  ;;  %v333_v46 = vadd.f32 %v332_v18, %v98_v39 }
  0xb0   :  { %v345_v37 = vadd.f32 %v344_v34, %v123_v23 }
  0xb1   :  { %v362_v54 = vadd.f32 %v361_v16, %v333_v46 }
  0xb3   :  { %v391_v61 = vadd.f32 %v390_v14, %v362_v54 }
  0xb5   :  { %v407_v0 = vmax.f32 %v391_v61, 0.0 }
  0xb6   :  { %v395_v20 = vpop.f32.mrf.mxu2  ;;  %v334_v21 = vpop.f32.mrf.mxu0 }
  0xb7   :  { %v363_v19 = vpop.f32.mrf.mxu1  ;;  %v335_v41 = vadd.f32 %v334_v21, %v103_v28 }
  0xb9   :  { %v364_v51 = vadd.f32 %v363_v19, %v335_v41 }
  0xbb   :  { %v393_v59 = vadd.f32 %v392_v17, %v364_v51 }
  0xbd   :  { %v408_v62 = vmax.f32 %v393_v59, 0.0 }
  0xbe   :  { %v397_v24 = vpop.f32.mrf.mxu2  ;;  %v337_v25 = vpop.f32.mrf.mxu0 }
  0xbf   :  { %v366_v22 = vpop.f32.mrf.mxu1  ;;  %v338_v36 = vadd.f32 %v337_v25, %v108_v4  ;;  %v414_v4 = vld [vmem:[%s893_s3 + $0x8] sm:$0x3] }
  0xc1   :  { %v367_v47 = vadd.f32 %v366_v22, %v338_v36 }
  0xc3   :  { %v396_v56 = vadd.f32 %v395_v20, %v367_v47 }
  0xc5   :  { %v409_v60 = vmax.f32 %v396_v56, 0.0 }
  0xc6   :  { %v400_v30 = vpop.f32.mrf.mxu2  ;;  %v339_v32 = vpop.f32.mrf.mxu0 }
  0xc7   :  { %v368_v26 = vpop.f32.mrf.mxu1  ;;  %v340_v35 = vadd.f32 %v339_v32, %v113_v3  ;;  %v413_v3 = vld [vmem:[%s893_s3] sm:$0xff] }
  0xc9   :  { %v369_v42 = vadd.f32 %v368_v26, %v340_v35 }
  0xcb   :  { %v398_v53 = vadd.f32 %v397_v24, %v369_v42 }
  0xcd   :  { %v410_v58 = vmax.f32 %v398_v53, 0.0 }
  0xce   :  { %v402_v45 = vpop.f32.mrf.mxu2 }
  0xcf   :  { %v371_v31 = vpop.f32.mrf.mxu1 }
  0xd0   :  { %v372_v38 = vadd.f32 %v371_v31, %v343_v33 }
  0xd2   :  { %v401_v49 = vadd.f32 %v400_v30, %v372_v38 }
  0xd4   :  { %v411_v55 = vmax.f32 %v401_v49, 0.0 }
  0xd7   :  { %v373_v40 = vpop.f32.mrf.mxu1 }
  0xd8   :  { %v374_v43 = vadd.f32 %v373_v40, %v345_v37 }
  0xda   :  { %v403_v48 = vadd.f32 %v402_v45, %v374_v43 }
  0xdc   :  { %v412_v52 = vmax.f32 %v403_v48, 0.0 }
  0xde   :  { %441 = vmatpush.msrb.mxu3 %v412_v52 }
  0xe0   :  { %442 = vmatpush.msrb.mxu3 %v411_v55 }
  0xe2   :  { %443 = vmatpush.msrb.mxu3 %v410_v58 }
  0xe4   :  { %444 = vmatpush.msrb.mxu3 %v409_v60 }
  0xe6   :  { %445 = vmatpush.msrb.mxu3 %v408_v62 }
  0xe8   :  { %446 = vmatpush.msrb.mxu3 %v407_v0 }
  0xea   :  { %447 = vmatpush.msrb.mxu3 %v406_v1 }
  0xec   :  { %448 = vmatpush.msrb.mxu3 %v405_v2 }
  0xed   :  { %621 = vmatmul.msk.f32.vlgmr.msrb.gmra.mxu3 %vm305_vm0, %v413_v3 }
  0xf5   :  { %622 = vmatmul.msk.f32.gmra.mxu3 %vm305_vm0, %v414_v4 }
 0x170   :  { %v450_v5 = vpop.f32.mrf.mxu3 }
 0x171   :  { %v451_v10 = vadd.f32 %v450_v5, %v420_v8 }
 0x178   :  { %v453_v7 = vpop.f32.mrf.mxu3 }
 0x179   :  { %v454_v9 = vadd.f32 %v453_v7, %v425_v6 }
 0x17b   :  { %v457_v11 = vsel %vm456_vm1, %v454_v9, -inf }
 0x17c   :  { %v458_v12 = vmax.f32 %v451_v10, %v457_v11 }
 0x17e   :  { %v459_v13 = vrot.slane %v458_v12, 4 }
 0x180   :  { %v460_v14 = vmax.f32 %v458_v12, %v459_v13 }
 0x182   :  { %v461_v15 = vrot.slane %v460_v14, 2 }
 0x184   :  { %v462_v16 = vmax.f32 %v460_v14, %v461_v15 }
 0x186   :  { %v463_v17 = vrot.slane %v462_v16, 1 }
 0x188   :  { %v464_v18 = vmax.f32 %v462_v16, %v463_v17 }
 0x18a   :  { %v465_v19 = vsub.f32 %v451_v10, %v464_v18  ;;  %v466_v20 = vsub.f32 %v454_v9, %v464_v18 }
 0x18c   :  { %v467_v21 = vmul.f32 1.442695, %v465_v19  ;;  %v469_v22 = vmul.f32 1.442695, %v466_v20 }
 0x18e   :  { %667 = vpow2.f32 %v467_v21 }
 0x18f   :  { %669 = vpow2.f32 %v469_v22 }
 0x194   :  { %v668_v23 = vpop.eup %667 }
 0x195   :  { %v670_v24 = vpop.eup %669 }
 0x196   :  { %v471_v25 = vsel %vm456_vm1, %v670_v24, 0.0 }
 0x197   :  { %v472_v26 = vadd.f32 %v668_v23, %v471_v25 }
 0x199   :  { %v473_v27 = vrot.slane %v472_v26, 4 }
 0x19b   :  { %v474_v28 = vadd.f32 %v473_v27, %v472_v26 }
 0x19d   :  { %v475_v29 = vrot.slane %v474_v28, 2 }
 0x19f   :  { %v476_v30 = vadd.f32 %v475_v29, %v474_v28 }
 0x1a1   :  { %v477_v31 = vrot.slane %v476_v30, 1 }
 0x1a3   :  { %v478_v32 = vadd.f32 %v477_v31, %v476_v30 }
 0x1a5   :  { %671 = vlog2.f32 %v478_v32 }
 0x1ab   :  { %v672_v33 = vpop.eup %671 }
 0x1ac   :  { %v480_v34 = vmul.f32 0.6931472, %v672_v33 }
 0x1ae   :  { %v481_v35 = vsub.f32 %v465_v19, %v480_v34  ;;  %v482_v36 = vsub.f32 %v466_v20, %v480_v34 }
 0x1b0   :  { %483 = vst [vmem:[%s894_s5] sm:$0xff] %v481_v35 }
 0x1b1   :  { %484 = vst [vmem:[%s894_s5 + $0x8] sm:$0x3] %v482_v36 }

</bundles_post_ra>
